<compile_context>
chip_gen: v7x
topology: tpu7x:2x2x1
jax: 0.10.0
libtpu: 0.0.40
codegen_flags: <defaults>
</compile_context>

<pallas_src>
import functools

import jax
import jax.numpy as jnp
from jax.experimental import pallas as pl
from jax.experimental.pallas import tpu as pltpu


def _wce_kernel(scores_ref, labels_ref, out_ref, *, n_rows: int, scale: float):
    """One batch tile of weighted cross-entropy, accumulated into out_ref.

    scores_ref: [TILE_N, C]  native dtype (bf16/f32) in VMEM
    labels_ref: [TILE_N, 1]  int32 in VMEM
    out_ref:    [1, 1]       f32 resident accumulator (constant index map)
    """
    i = pl.program_id(0)
    tile_n = scores_ref.shape[0]

    @pl.when(i == 0)
    def _():
        out_ref[...] = jnp.zeros_like(out_ref)

    s = scores_ref[...].astype(jnp.float32)                           # [T, C]

    # --- log-sum-exp over the class (lane) axis; no full softmax ----------
    m = jnp.max(s, axis=1, keepdims=True)                             # [T, 1]
    lse = m + jnp.log(jnp.sum(jnp.exp(s - m), axis=1, keepdims=True)) # [T, 1]

    # --- gather the target logit via a one-hot lane mask ------------------
    col = jax.lax.broadcasted_iota(jnp.int32, s.shape, 1)             # [T, C]
    tgt = jnp.sum(jnp.where(col == labels_ref[...], s, 0.0),
                  axis=1, keepdims=True)                              # [T, 1]

    per_row = lse - tgt                                               # [T, 1]

    # --- mask padded rows of the last (partial) tile -----------------------
    row = i * tile_n + jax.lax.broadcasted_iota(jnp.int32, per_row.shape, 0)
    per_row = jnp.where(row < n_rows, per_row, 0.0)

    out_ref[...] += jnp.sum(per_row, axis=0, keepdims=True)           # [1, 1]

    @pl.when(i == pl.num_programs(0) - 1)
    def _():
        # finalize: weight * mean  ==  accumulated_sum * (weight / N)
        out_ref[...] = out_ref[...] * jnp.float32(scale)


def _choose_tile_n(n: int, c: int, itemsize: int) -> int:
    """Batch-tile size: multiple of 8, <= ~4 MiB per scores buffer.

    4 MiB/buffer keeps (scores + labels) double-buffered plus in-body f32
    temporaries comfortably under the scoped VMEM limit on v5e/v6e and the
    smaller 64 MiB physical VMEM of v7x.
    """
    budget = 4 << 20
    t = budget // max(1, c * itemsize)
    t = max(8, min(512, (t // 8) * 8))
    n_pad8 = ((n + 7) // 8) * 8
    return min(t, n_pad8)


def weighted_cross_entropy(scores: jax.Array, labels: jax.Array,
                           weight: float, *, tile_n: int | None = None) -> jax.Array:
    """Pallas TPU: weight * F.cross_entropy(scores, labels) (mean reduction)."""
    n, c = scores.shape
    if tile_n is None:
        tile_n = _choose_tile_n(n, c, jnp.dtype(scores.dtype).itemsize)
    grid = pl.cdiv(n, tile_n)

    labels_2d = labels.reshape(n, 1).astype(jnp.int32)
    kernel = functools.partial(_wce_kernel, n_rows=int(n),
                               scale=float(weight) / float(n))

    out = pl.pallas_call(
        kernel,
        out_shape=jax.ShapeDtypeStruct((1, 1), jnp.float32),
        grid=(grid,),
        in_specs=[
            # scores: native dtype, one batch tile per grid step, full class axis
            pl.BlockSpec((tile_n, c), lambda i: (i, 0)),
            # labels: matching batch tile
            pl.BlockSpec((tile_n, 1), lambda i: (i, 0)),
        ],
        # constant index map -> resident accumulator, written back once
        out_specs=pl.BlockSpec((1, 1), lambda i: (0, 0)),
        compiler_params=pltpu.CompilerParams(
            dimension_semantics=("arbitrary",)),
    )(scores, labels_2d)
    return out[0, 0]


class UnionLoss:
    """Pallas/JAX equivalent of the PyTorch UnionLoss module's forward."""

    def __init__(self, weights):
        self.weights = weights
        self.threshold = {'B': 0.39, 'F': 0.5, 'E': 0.37, 'C': 0}  # unused in forward

    def __call__(self, scores: dict, label: jax.Array) -> dict:
        return {k: weighted_cross_entropy(v, label, self.weights[k])
                for k, v in scores.items()}


def _ce_ref(scores, labels, weight):
    """Pure-JAX reference: weight * mean(logsumexp(s) - s[i, label_i])."""
    s = scores.astype(jnp.float32)
    lse = jax.scipy.special.logsumexp(s, axis=1)
    tgt = jnp.take_along_axis(s, labels.reshape(-1, 1).astype(jnp.int32), axis=1)[:, 0]
    return weight * jnp.mean(lse - tgt)


if __name__ == "__main__":
    key = jax.random.PRNGKey(0)

    # --- UnionLoss over a dict of heads (small shapes: batch=8, classes=32) ---
    N, C = 8, 32
    weights = {'B': 1.0, 'F': 0.5, 'E': 2.0, 'C': 0.25}

    k_lab, *k_heads = jax.random.split(key, 1 + len(weights))
    label = jax.random.randint(k_lab, (N,), 0, C, dtype=jnp.int32)
    scores = {k: jax.random.normal(kk, (N, C), dtype=jnp.float32)
              for k, kk in zip(weights, k_heads)}

    loss_mod = UnionLoss(weights)
    total = loss_mod(scores, label)
    jax.block_until_ready(total)

    for k in weights:
        ref = _ce_ref(scores[k], label, weights[k])
        assert jnp.allclose(total[k], ref, atol=1e-4, rtol=1e-4), (k, total[k], ref)

    # --- multi-tile + partial-tile masking check (N not a multiple of tile) ---
    N2, C2 = 20, 32
    k_s2, k_l2, k_s3 = jax.random.split(jax.random.PRNGKey(1), 3)
    s2 = jax.random.normal(k_s2, (N2, C2), dtype=jnp.float32)
    l2 = jax.random.randint(k_l2, (N2,), 0, C2, dtype=jnp.int32)
    got2 = weighted_cross_entropy(s2, l2, 0.7, tile_n=8)   # grid=3, last tile padded
    assert jnp.allclose(got2, _ce_ref(s2, l2, 0.7), atol=1e-4, rtol=1e-4), got2

    # --- bf16 pass-through check (native-dtype input, f32 math in-kernel) ---
    s3 = jax.random.normal(k_s3, (N, C), dtype=jnp.float32).astype(jnp.bfloat16)
    got3 = weighted_cross_entropy(s3, label, 1.5)
    assert jnp.allclose(got3, _ce_ref(s3, label, 1.5), atol=1e-3, rtol=1e-3), got3

    jax.block_until_ready((got2, got3))
    print("KERNEL_OK")
</pallas_src>

<mosaic_0001>
module attributes {stable_mosaic.version = 11 : i64} {
  func.func @_wce_kernel(%arg0: i32, %arg1: memref<8x32xf32, #tpu.memory_space<vmem>>, %arg2: memref<8x1xi32, #tpu.memory_space<vmem>>, %arg3: memref<1x1xf32, #tpu.memory_space<vmem>>) attributes {dimension_semantics = [#tpu.dimension_semantics<arbitrary>], iteration_bounds = array<i64: 1>, scalar_prefetch = 0 : i64, scratch_operands = 0 : i64, tpu.core_type = #tpu.core_type<tc>, window_params = [{transform_indices = @transform_0, window_bounds = array<i64: 8, 32>}, {transform_indices = @transform_1, window_bounds = array<i64: 8, 1>}, {pipeline_mode = #tpu.pipeline_mode<synchronous>, transform_indices = @transform_2, window_bounds = array<i64: 1, 1>}]} {
    %c0_i32 = arith.constant 0 : i32
    %0 = arith.cmpi eq, %arg0, %c0_i32 : i32
    %1 = arith.extui %0 : i1 to i32
    %c0_i32_0 = arith.constant 0 : i32
    %2 = arith.cmpi ne, %1, %c0_i32_0 : i32
    scf.if %2 {
      %cst_16 = arith.constant 0.000000e+00 : f32
      %38 = vector.broadcast %cst_16 : f32 to vector<1x1xf32>
      %c0_17 = arith.constant 0 : index
      %c0_18 = arith.constant 0 : index
      %39 = vector.load %arg3[%c0_17, %c0_18] : memref<1x1xf32, #tpu.memory_space<vmem>>, vector<1x1xf32>
      tpu.vector_store %arg3[%c0_17, %c0_18], %38 {strides = array<i32>} : memref<1x1xf32, #tpu.memory_space<vmem>>, vector<1x1xf32>,
    } else {
    }
    %c0 = arith.constant 0 : index
    %c0_1 = arith.constant 0 : index
    %3 = vector.load %arg1[%c0, %c0_1] : memref<8x32xf32, #tpu.memory_space<vmem>>, vector<8x32xf32>
    %cst = arith.constant dense<0xFF800000> : vector<8xf32>
    %4 = vector.multi_reduction <maximumf>, %3, %cst [1] : vector<8x32xf32> to vector<8xf32>
    %5 = vector.shape_cast %4 : vector<8xf32> to vector<8x1xf32>
    %6 = vector.broadcast %5 : vector<8x1xf32> to vector<8x32xf32>
    %7 = arith.subf %3, %6 : vector<8x32xf32>
    %8 = math.exp %7 : vector<8x32xf32>
    %cst_2 = arith.constant dense<0.000000e+00> : vector<8xf32>
    %9 = vector.multi_reduction <add>, %8, %cst_2 [1] : vector<8x32xf32> to vector<8xf32>
    %10 = vector.shape_cast %9 : vector<8xf32> to vector<8x1xf32>
    %11 = math.log %10 : vector<8x1xf32>
    %12 = arith.addf %5, %11 : vector<8x1xf32>
    %13 = tpu.iota {dimensions = array<i32: 1>} : vector<8x32xi32>
    %c0_3 = arith.constant 0 : index
    %c0_4 = arith.constant 0 : index
    %14 = vector.load %arg2[%c0_3, %c0_4] : memref<8x1xi32, #tpu.memory_space<vmem>>, vector<8x1xi32>
    %15 = vector.broadcast %14 : vector<8x1xi32> to vector<8x32xi32>
    %16 = arith.cmpi eq, %13, %15 : vector<8x32xi32>
    %cst_5 = arith.constant 0.000000e+00 : f32
    %17 = vector.broadcast %cst_5 : f32 to vector<8x32xf32>
    %18 = arith.select %16, %3, %17 : vector<8x32xi1>, vector<8x32xf32>
    %cst_6 = arith.constant dense<0.000000e+00> : vector<8xf32>
    %19 = vector.multi_reduction <add>, %18, %cst_6 [1] : vector<8x32xf32> to vector<8xf32>
    %20 = vector.shape_cast %19 : vector<8xf32> to vector<8x1xf32>
    %21 = arith.subf %12, %20 : vector<8x1xf32>
    %c8_i32 = arith.constant 8 : i32
    %22 = arith.muli %arg0, %c8_i32 : i32
    %23 = tpu.iota {dimensions = array<i32: 0>} : vector<8x1xi32>
    %24 = vector.broadcast %22 : i32 to vector<8x1xi32>
    %25 = arith.addi %24, %23 : vector<8x1xi32>
    %c8_i32_7 = arith.constant 8 : i32
    %26 = vector.broadcast %c8_i32_7 : i32 to vector<8x1xi32>
    %27 = arith.cmpi slt, %25, %26 : vector<8x1xi32>
    %cst_8 = arith.constant 0.000000e+00 : f32
    %28 = vector.broadcast %cst_8 : f32 to vector<8x1xf32>
    %29 = arith.select %27, %21, %28 : vector<8x1xi1>, vector<8x1xf32>
    %c0_9 = arith.constant 0 : index
    %c0_10 = arith.constant 0 : index
    %30 = vector.load %arg3[%c0_9, %c0_10] : memref<1x1xf32, #tpu.memory_space<vmem>>, vector<1x1xf32>
    %cst_11 = arith.constant dense<0.000000e+00> : vector<1xf32>
    %31 = vector.multi_reduction <add>, %29, %cst_11 [0] : vector<8x1xf32> to vector<1xf32>
    %32 = vector.shape_cast %31 : vector<1xf32> to vector<1x1xf32>
    %33 = arith.addf %30, %32 : vector<1x1xf32>
    %c0_12 = arith.constant 0 : index
    %c0_13 = arith.constant 0 : index
    %34 = vector.load %arg3[%c0_12, %c0_13] : memref<1x1xf32, #tpu.memory_space<vmem>>, vector<1x1xf32>
    tpu.vector_store %arg3[%c0_12, %c0_13], %33 {strides = array<i32>} : memref<1x1xf32, #tpu.memory_space<vmem>>, vector<1x1xf32>,
    %c0_i32_14 = arith.constant 0 : i32
    %35 = arith.cmpi eq, %arg0, %c0_i32_14 : i32
    %36 = arith.extui %35 : i1 to i32
    %c0_i32_15 = arith.constant 0 : i32
    %37 = arith.cmpi ne, %36, %c0_i32_15 : i32
    scf.if %37 {
      %c0_16 = arith.constant 0 : index
      %c0_17 = arith.constant 0 : index
      %38 = vector.load %arg3[%c0_16, %c0_17] : memref<1x1xf32, #tpu.memory_space<vmem>>, vector<1x1xf32>
      %cst_18 = arith.constant 1.250000e-01 : f32
      %39 = vector.broadcast %cst_18 : f32 to vector<1x1xf32>
      %40 = arith.mulf %38, %39 : vector<1x1xf32>
      %c0_19 = arith.constant 0 : index
      %c0_20 = arith.constant 0 : index
      %41 = vector.load %arg3[%c0_19, %c0_20] : memref<1x1xf32, #tpu.memory_space<vmem>>, vector<1x1xf32>
      tpu.vector_store %arg3[%c0_19, %c0_20], %40 {strides = array<i32>} : memref<1x1xf32, #tpu.memory_space<vmem>>, vector<1x1xf32>,
    } else {
    }
    return
  }
  func.func @transform_0(%arg0: i32) -> (i32, i32) {
    %c0_i32 = arith.constant 0 : i32
    %c0_i32_0 = arith.constant 0 : i32
    return %arg0, %c0_i32 : i32, i32
  }
  func.func @transform_1(%arg0: i32) -> (i32, i32) {
    %c0_i32 = arith.constant 0 : i32
    %c0_i32_0 = arith.constant 0 : i32
    return %arg0, %c0_i32 : i32, i32
  }
  func.func @transform_2(%arg0: i32) -> (i32, i32) {
    %c0_i32 = arith.constant 0 : i32
    %c0_i32_0 = arith.constant 0 : i32
    %c0_i32_1 = arith.constant 0 : i32
    return %c0_i32, %c0_i32_0 : i32, i32
  }
}

</mosaic_0001>

<bundles_post_ra>
// kernel: tpu_custom_call.1
= control target key start
LH: loop header
LB: loop body
LE: loop exit
PB: predicated region body
PF: predicated region fallthrough
CT: control target
= control target key end

     0   :  { %vm19_vm0 = vcmask 261120   ;;  %s155_s0 = inlined_call_operand.vmem [shape: f32[8,32], index: 0, kind: input, shape index: {}]   ;;  %s156_s1 = inlined_call_operand.vmem [shape: s32[8,1], index: 1, kind: input, shape index: {}]   ;;  %s157_s2 = inlined_call_operand.hbm [shape: f32[1,1], index: 2, kind: output, shape index: {}]  }
   0x1   :  { %v18_v0 = vld [vmem:[%s155_s0] sm:$0xff] }
   0x2   :  { %7 = vsyncpa [#allocation3], 0  ;;  %v20_v1 = vsel %vm19_vm0, %v18_v0, -inf  ;;  %v113_v2 = vmov 0   ;;  %v34_v3 = vld [vmem:[%s156_s1] sm:$0xff]  ;;  %v32_v7 = vlaneseq  ;;  %vm16_vm2 = vcmask 0  }
   0x3   :  { %84 = vset.pattern.permute.xlu0 %v113_v2  ;;  %v114_v14 = vmov 0.0   ;;  %s115_s0 = smov [#allocation2]  }
   0x4   :  { %21 = vmax.xlane.f32.xlu0 %v20_v1  ;;  %v33_v8 = vand.u32 127, %v32_v7  ;;  %17 = vst.msk [vmem:[#allocation2] sm:$0x1] %vm16_vm2, %v114_v14  ;;  %s73_s1 = sshll.u32 %s115_s0, 4  ;;  %s74_s1 = int_to_ptr.vmem [resolvable:$true] %s73_s1 }
   0x5   :  { %s89_s13 = scalar_lea.vmem %s74_s1, 16  ;;  %s93_s14 = scalar_lea.vmem %s74_s1, 32 }
   0x6   :  { %p90_p0 = scmp.ne.s32.totalorder %s74_s1, %s89_s13  ;;  %p94_p1 = scmp.lt.s32.totalorder %s74_s1, %s74_s1 }
   0x7   :  { %p95_p2 = scmp.lt.s32.totalorder %s93_s14, %s89_s13 }
   0x9   :  { %p96_p3 = por %p95_p2, %p94_p1 }
   0xb   :  { %v51_v26 = vld [vmem:[#allocation2] sm:$0x1]  ;;  %p97_p4 = pnand %p96_p3, %p90_p0 }
  0x1a   :  { %36 = vperm.xlu0 %84, %v34_v3  }
  0x91   :  { %v22_v4 = vpop.xlane.xlu0 %21 }
  0x92   :  { %v23_v5 = vsub.f32 %v18_v0, %v22_v4 }
  0x94   :  { %v24_v6 = vmul.f32 1.442695, %v23_v5 }
  0x96   :  { %85 = vpow2.f32 %v24_v6 }
  0x99   :  { %v37_v9 = vpop.permute.xlu0 %36 }
  0x9a   :  { %vm38_vm1 = vcmp.eq.s32.totalorder %v33_v8, %v37_v9 }
  0x9b   :  { %v39_v11 = vsel %vm38_vm1, %v18_v0, 0.0 }
  0x9c   :  { %v40_v13 = vsel %vm19_vm0, %v39_v11, 0.0 }
  0xa0   :  { %v86_v10 = vpop.eup %85 }
  0xa1   :  { %v26_v12 = vsel %vm19_vm0, %v86_v10, 0.0 }
  0xa2   :  { %27 = vadd.xlane.f32.xlu1 %v26_v12 }
  0xa6   :  { %41 = vadd.xlane.f32.xlu1 %v40_v13 }
 0x12f   :  { %v28_v15 = vpop.xlane.xlu1 %27 }
 0x130   :  { %87 = vlog2.f32 %v28_v15 }
 0x133   :  { %v42_v18 = vpop.xlane.xlu1 %41 }
 0x13a   :  { %v88_v16 = vpop.eup %87 }
 0x13b   :  { %v30_v17 = vmul.f32 0.6931472, %v88_v16 }
 0x13d   :  { %v31_v19 = vadd.f32 %v30_v17, %v22_v4 }
 0x13f   :  { %v43_v20 = vsub.f32 %v31_v19, %v42_v18 }
 0x141   :  { %v52_v21 = vrot.slane %v43_v20, 4 }
 0x143   :  { %v53_v22 = vadd.f32 %v52_v21, %v43_v20 }
 0x145   :  { %v54_v23 = vrot.slane %v53_v22, 2 }
 0x147   :  { %v55_v24 = vadd.f32 %v54_v23, %v53_v22 }
 0x149   :  { %v56_v25 = vrot.slane %v55_v24, 1 }
 0x14b   :  { %v57_v27 = vadd.f32 %v56_v25, %v55_v24 }
 0x14d   :  { %v58_v28 = vadd.f32 %v57_v27, %v51_v26 }
 0x14f   :  { %60 = vst.msk [vmem:[#allocation2] sm:$0x1] %vm16_vm2, %v58_v28 }
 0x156   :  { %v64_v29 = vld [vmem:[#allocation2] sm:$0x1] }
 0x157   :  { %v65_v30 = vmul.f32 0.125, %v64_v29 }
 0x159   :  { %66 = vst.msk [vmem:[#allocation2] sm:$0x1] %vm16_vm2, %v65_v30 }
 0x15a   :  { %100 = shalt.err (!%p97_p4)
}
 0x15b   :  { %s101_s17 = scalar_lea.hbm %s157_s2, 16 }
 0x15c   :  { %p102_p5 = scmp.ne.s32.totalorder %s157_s2, %s101_s17  ;;  %p105_p6 = scmp.lt.u32.totalorder %s101_s17, %s157_s2 }
 0x15e   :  { %p107_p7 = pnand %p105_p6, %p102_p5 }
 0x160   :  { %110 = shalt.err (!%p107_p7)
}
 0x161   :  { %76 = dma.vmem_to_hbm [thread:$0]  %s74_s1, 16, %s157_s2, [#allocation3]  }
 0x162   :  { %111 = dma.done.wait [#allocation3], 16  }
 0x163   :  { %112 = vsyncadd [#allocation3], 4294967280 }
 0x164   :  { %80 = vsyncpa [#allocation3], 1 }

</bundles_post_ra>
